<compile_context>
chip_gen: v7x
topology: tpu7x:2x2x1
jax: 0.10.0
libtpu: 0.0.40
codegen_flags: <defaults>
</compile_context>

<pallas_src>
import math

import numpy as np
import jax
import jax.numpy as jnp
from jax.experimental import pallas as pl
from jax.experimental.pallas import tpu as pltpu

_OUT_COLS = 40   # torch module hard-codes torch.zeros((B, 40))
_LANE = 128


def _round_up(n, m):
    return ((n + m - 1) // m) * m


def _leaky_relu(x, negative_slope=0.01):
    # torch.nn.LeakyReLU default negative_slope = 0.01
    return jnp.where(x >= 0, x, negative_slope * x)


def _holder_kernel(x_ref, w1_ref, b1_ref, w2_ref, b2_ref, w3_ref, b3_ref, o_ref):
    """One grid step == one per-seq MLP; that model's weights are streamed in.

    Layers 1/2: bf16 MXU matmuls with f32 accumulation (+f32 bias, LeakyReLU).
    Layer 3 (output_dim == 1): dot_general contracting H2, batch on the lane
    axis -> output row (1, B_pad) produced directly (lane-dense, no transpose).
    """
    b_pad = x_ref.shape[0]
    b_lane = o_ref.shape[2]

    x = x_ref[...].astype(jnp.bfloat16)                                  # (B_pad, IN_max)

    # ---- layer 1 -----------------------------------------------------------
    h1 = jnp.dot(x, w1_ref[0], preferred_element_type=jnp.float32) + b1_ref[0]
    h1 = _leaky_relu(h1)                                                 # (B_pad, H_max) f32

    # ---- layer 2 -----------------------------------------------------------
    h2 = jnp.dot(h1.astype(jnp.bfloat16), w2_ref[0],
                 preferred_element_type=jnp.float32) + b2_ref[0]
    h2 = _leaky_relu(h2)                                                 # (B_pad, H2_max) f32

    # ---- layer 3: (1, H2) x (B_pad, H2)^T -> (1, B_pad) --------------------
    y = jax.lax.dot_general(w3_ref[0], h2.astype(jnp.bfloat16),
                            dimension_numbers=(((1,), (1,)), ((), ())),
                            preferred_element_type=jnp.float32)          # (1, B_pad)
    y = _leaky_relu(y + b3_ref[0])                                       # b3_ref[0]: (1, 1)

    # Pad lanes so the store is a full, lane-dense vst.
    if b_lane > b_pad:
        y = jnp.concatenate(
            [y, jnp.zeros((1, b_lane - b_pad), jnp.float32)], axis=1)
    o_ref[0] = y


def init_fc_model_holder_params(input_dim, hidden_dim, output_dim, seq_count, key):
    """Deterministic init mirroring fc_model.reset_parameters():
    every parameter of model i ~ U(-1/sqrt(hidden_dim*(i+1)), +1/sqrt(...)).

    Zero-padded per-seq layout (padding is exact: LeakyReLU(0)=0 and padded
    weight rows/cols are zero, so padded matmuls == per-model slicing):
      W1: (S, IN_max, H_max)  bf16     b1: (S, 1, H_max)   f32
      W2: (S, H_max, H2_max)  bf16     b2: (S, 1, H2_max)  f32
      W3: (S, 1, H2_max)      bf16     b3: (S, 1, 1)       f32
    """
    assert output_dim == 1, "forward() squeeze/column-assign requires output_dim == 1"
    IN_max = input_dim * seq_count
    H_max = hidden_dim * seq_count
    H2_max = (hidden_dim * seq_count) // 2

    W1 = np.zeros((seq_count, IN_max, H_max), np.float32)
    b1 = np.zeros((seq_count, 1, H_max), np.float32)
    W2 = np.zeros((seq_count, H_max, H2_max), np.float32)
    b2 = np.zeros((seq_count, 1, H2_max), np.float32)
    W3 = np.zeros((seq_count, 1, H2_max), np.float32)
    b3 = np.zeros((seq_count, 1, 1), np.float32)

    for i in range(seq_count):
        in_i = input_dim * (i + 1)
        h_i = hidden_dim * (i + 1)
        h2_i = h_i // 2
        std = 1.0 / math.sqrt(h_i)
        key, k1, k2, k3, k4, k5, k6 = jax.random.split(key, 7)
        u = lambda k, shp: np.asarray(jax.random.uniform(k, shp, jnp.float32, -std, std))
        W1[i, :in_i, :h_i] = u(k1, (in_i, h_i))
        b1[i, 0, :h_i] = u(k2, (h_i,))
        W2[i, :h_i, :h2_i] = u(k3, (h_i, h2_i))
        b2[i, 0, :h2_i] = u(k4, (h2_i,))
        W3[i, 0, :h2_i] = u(k5, (h2_i,))
        b3[i, 0, 0] = u(k6, (1,))[0]

    # Weights in bf16 (halve HBM bytes); biases stay f32 (added to f32 accumulators).
    return (jnp.asarray(W1, jnp.bfloat16), jnp.asarray(b1, jnp.float32),
            jnp.asarray(W2, jnp.bfloat16), jnp.asarray(b2, jnp.float32),
            jnp.asarray(W3, jnp.bfloat16), jnp.asarray(b3, jnp.float32))


def fc_model_holder_forward(x_pair, params):
    # torch: x = x[1]
    x = x_pair[1].astype(jnp.float32)          # (B, S)
    B, S = x.shape
    W1, b1, W2, b2, W3, b3 = params
    seq_count, IN_max, H_max = W1.shape
    H2_max = W2.shape[2]
    assert S <= seq_count, "forward uses fc_model_list[seq] for seq < x.size(1)"
    assert S <= _OUT_COLS, "torch module hard-codes a (B, 40) output buffer"

    B_pad = _round_up(B, 8)                    # f32 sublane multiple (MXU M rows)
    B_lane = _round_up(B_pad, _LANE)           # lane-dense kernel output row width

    # Zero-pad features to IN_max (padded W1 rows are zero -> equals x[:, :seq+1]).
    x_pad = jnp.zeros((B_pad, IN_max), jnp.float32).at[:B, :S].set(x)

    out_sb = pl.pallas_call(
        _holder_kernel,
        out_shape=jax.ShapeDtypeStruct((S, 1, B_lane), jnp.float32),
        grid=(S,),                                                   # one step per seq model
        in_specs=[
            pl.BlockSpec((B_pad, IN_max), lambda s: (0, 0)),         # x (constant index)
            pl.BlockSpec((1, IN_max, H_max), lambda s: (s, 0, 0)),   # W1[s] (streamed)
            pl.BlockSpec((1, 1, H_max), lambda s: (s, 0, 0)),        # b1[s]
            pl.BlockSpec((1, H_max, H2_max), lambda s: (s, 0, 0)),   # W2[s] (streamed)
            pl.BlockSpec((1, 1, H2_max), lambda s: (s, 0, 0)),       # b2[s]
            pl.BlockSpec((1, 1, H2_max), lambda s: (s, 0, 0)),       # W3[s]
            pl.BlockSpec((1, 1, 1), lambda s: (s, 0, 0)),            # b3[s]
        ],
        out_specs=pl.BlockSpec((1, 1, B_lane), lambda s: (s, 0, 0)), # lane-dense row
        compiler_params=pltpu.CompilerParams(
            # independent per-seq models -> shard across both TensorCores on v7x
            dimension_semantics=("parallel",),
        ),
    )(x_pad, W1, b1, W2, b2, W3, b3)

    # torch: out_val = zeros((B, 40)); columns s < S filled, rest stay 0.
    out = jnp.zeros((B, _OUT_COLS), jnp.float32)
    out = out.at[:, :S].set(out_sb[:, 0, :B].T)
    return out


def _reference_forward(x_pair, params):
    """Pure-JAX reference (same bf16-weight / f32-accumulation math, per-model loop)."""
    x = x_pair[1].astype(jnp.float32)
    B, S = x.shape
    W1, b1, W2, b2, W3, b3 = params
    IN_max = W1.shape[1]
    x_pad = jnp.zeros((B, IN_max), jnp.float32).at[:, :S].set(x)
    cols = []
    for s in range(S):
        h = _leaky_relu(jnp.dot(x_pad.astype(jnp.bfloat16), W1[s],
                                preferred_element_type=jnp.float32) + b1[s])
        h = _leaky_relu(jnp.dot(h.astype(jnp.bfloat16), W2[s],
                                preferred_element_type=jnp.float32) + b2[s])
        y = jnp.dot(h.astype(jnp.bfloat16), W3[s].T,
                    preferred_element_type=jnp.float32) + b3[s]          # (B, 1)
        cols.append(_leaky_relu(y)[:, 0])
    out = jnp.stack(cols, axis=1)
    return jnp.zeros((B, _OUT_COLS), jnp.float32).at[:, :S].set(out)


if __name__ == "__main__":
    key = jax.random.PRNGKey(0)

    def run_case(name, input_dim, hidden_dim, seq_count, batch, case_key):
        kp, kx0, kx1 = jax.random.split(case_key, 3)
        params = init_fc_model_holder_params(input_dim, hidden_dim, 1, seq_count, kp)
        # The torch forward indexes x[1]; feed a pair and only x[1] is used.
        x0 = jax.random.normal(kx0, (batch, seq_count), jnp.float32)
        x1 = jax.random.normal(kx1, (batch, seq_count), jnp.float32)
        x_pair = (x0, x1)
        out = jax.block_until_ready(fc_model_holder_forward(x_pair, params))
        ref = jax.block_until_ready(_reference_forward(x_pair, params))
        assert out.shape == (batch, _OUT_COLS) and out.dtype == jnp.float32
        assert bool(jnp.allclose(out, ref, rtol=2e-3, atol=2e-3)), f"{name}: mismatch vs reference"

    k_small, k_big = jax.random.split(key)
    # Small, forward-consistent shapes (input_dim must be 1 for x[:, :seq+1] to match
    # fc_model input sizes); output_dim=1 required by the squeeze/column-assign.
    run_case("small", input_dim=1, hidden_dim=16, seq_count=4, batch=2, case_key=k_small)
    # seq_count = 40 regime: exercises the streamed-weight 40-step grid and the full
    # 40-column torch output buffer with modest per-model hidden sizes.
    run_case("seq40", input_dim=1, hidden_dim=8, seq_count=40, batch=4, case_key=k_big)

    print("KERNEL_OK")
</pallas_src>

<mosaic_0001>
module attributes {stable_mosaic.version = 11 : i64} {
  func.func @_holder_kernel(%arg0: i32, %arg1: memref<8x4xf32, #tpu.memory_space<vmem>>, %arg2: memref<1x4x64xbf16, #tpu.memory_space<vmem>>, %arg3: memref<1x1x64xf32, #tpu.memory_space<vmem>>, %arg4: memref<1x64x32xbf16, #tpu.memory_space<vmem>>, %arg5: memref<1x1x32xf32, #tpu.memory_space<vmem>>, %arg6: memref<1x1x32xbf16, #tpu.memory_space<vmem>>, %arg7: memref<1x1x1xf32, #tpu.memory_space<vmem>>, %arg8: memref<1x1x128xf32, #tpu.memory_space<vmem>>) attributes {dimension_semantics = [#tpu.dimension_semantics<parallel>], iteration_bounds = array<i64: 4>, scalar_prefetch = 0 : i64, scratch_operands = 0 : i64, tpu.core_type = #tpu.core_type<tc>, window_params = [{pipeline_mode = #tpu.pipeline_mode<synchronous>, transform_indices = @transform_0, window_bounds = array<i64: 8, 4>}, {transform_indices = @transform_1, window_bounds = array<i64: 1, 4, 64>}, {transform_indices = @transform_2, window_bounds = array<i64: 1, 1, 64>}, {transform_indices = @transform_3, window_bounds = array<i64: 1, 64, 32>}, {transform_indices = @transform_4, window_bounds = array<i64: 1, 1, 32>}, {transform_indices = @transform_5, window_bounds = array<i64: 1, 1, 32>}, {transform_indices = @transform_6, window_bounds = array<i64: 1, 1, 1>}, {transform_indices = @transform_7, window_bounds = array<i64: 1, 1, 128>}]} {
    %c0 = arith.constant 0 : index
    %c0_0 = arith.constant 0 : index
    %0 = vector.load %arg1[%c0, %c0_0] : memref<8x4xf32, #tpu.memory_space<vmem>>, vector<8x4xf32>
    %1 = arith.truncf %0 : vector<8x4xf32> to vector<8x4xbf16>
    %c0_1 = arith.constant 0 : index
    %c0_2 = arith.constant 0 : index
    %c0_3 = arith.constant 0 : index
    %2 = vector.load %arg2[%c0_1, %c0_2, %c0_3] : memref<1x4x64xbf16, #tpu.memory_space<vmem>>, vector<1x4x64xbf16>
    %3 = vector.shape_cast %2 : vector<1x4x64xbf16> to vector<4x64xbf16>
    %cst = arith.constant dense<0.000000e+00> : vector<8x64xf32>
    %4 = tpu.matmul %1, %3, %cst {dimension_numbers = #tpu.dot_dimension_numbers<[1], [0], [0], [1], [0, 0, 1, 1], [], []>} : vector<8x4xbf16>, vector<4x64xbf16>, vector<8x64xf32> -> vector<8x64xf32>
    %c0_4 = arith.constant 0 : index
    %c0_5 = arith.constant 0 : index
    %c0_6 = arith.constant 0 : index
    %5 = vector.load %arg3[%c0_4, %c0_5, %c0_6] : memref<1x1x64xf32, #tpu.memory_space<vmem>>, vector<1x1x64xf32>
    %6 = vector.shape_cast %5 : vector<1x1x64xf32> to vector<1x64xf32>
    %7 = vector.broadcast %6 : vector<1x64xf32> to vector<8x64xf32>
    %8 = arith.addf %4, %7 : vector<8x64xf32>
    %cst_7 = arith.constant 0.000000e+00 : f32
    %9 = vector.broadcast %cst_7 : f32 to vector<8x64xf32>
    %10 = arith.cmpf oge, %8, %9 : vector<8x64xf32>
    %cst_8 = arith.constant 0.00999999977 : f32
    %11 = vector.broadcast %cst_8 : f32 to vector<8x64xf32>
    %12 = arith.mulf %11, %8 : vector<8x64xf32>
    %13 = arith.select %10, %8, %12 : vector<8x64xi1>, vector<8x64xf32>
    %14 = arith.truncf %13 : vector<8x64xf32> to vector<8x64xbf16>
    %c0_9 = arith.constant 0 : index
    %c0_10 = arith.constant 0 : index
    %c0_11 = arith.constant 0 : index
    %15 = vector.load %arg4[%c0_9, %c0_10, %c0_11] : memref<1x64x32xbf16, #tpu.memory_space<vmem>>, vector<1x64x32xbf16>
    %16 = vector.shape_cast %15 : vector<1x64x32xbf16> to vector<64x32xbf16>
    %cst_12 = arith.constant dense<0.000000e+00> : vector<8x32xf32>
    %17 = tpu.matmul %14, %16, %cst_12 {dimension_numbers = #tpu.dot_dimension_numbers<[1], [0], [0], [1], [0, 0, 1, 1], [], []>} : vector<8x64xbf16>, vector<64x32xbf16>, vector<8x32xf32> -> vector<8x32xf32>
    %c0_13 = arith.constant 0 : index
    %c0_14 = arith.constant 0 : index
    %c0_15 = arith.constant 0 : index
    %18 = vector.load %arg5[%c0_13, %c0_14, %c0_15] : memref<1x1x32xf32, #tpu.memory_space<vmem>>, vector<1x1x32xf32>
    %19 = vector.shape_cast %18 : vector<1x1x32xf32> to vector<1x32xf32>
    %20 = vector.broadcast %19 : vector<1x32xf32> to vector<8x32xf32>
    %21 = arith.addf %17, %20 : vector<8x32xf32>
    %cst_16 = arith.constant 0.000000e+00 : f32
    %22 = vector.broadcast %cst_16 : f32 to vector<8x32xf32>
    %23 = arith.cmpf oge, %21, %22 : vector<8x32xf32>
    %cst_17 = arith.constant 0.00999999977 : f32
    %24 = vector.broadcast %cst_17 : f32 to vector<8x32xf32>
    %25 = arith.mulf %24, %21 : vector<8x32xf32>
    %26 = arith.select %23, %21, %25 : vector<8x32xi1>, vector<8x32xf32>
    %c0_18 = arith.constant 0 : index
    %c0_19 = arith.constant 0 : index
    %c0_20 = arith.constant 0 : index
    %27 = vector.load %arg6[%c0_18, %c0_19, %c0_20] : memref<1x1x32xbf16, #tpu.memory_space<vmem>>, vector<1x1x32xbf16>
    %28 = vector.shape_cast %27 : vector<1x1x32xbf16> to vector<1x32xbf16>
    %29 = arith.truncf %26 : vector<8x32xf32> to vector<8x32xbf16>
    %cst_21 = arith.constant dense<0.000000e+00> : vector<1x8xf32>
    %30 = tpu.matmul %28, %29, %cst_21 {dimension_numbers = #tpu.dot_dimension_numbers<[1], [1], [0], [0], [0, 0, 1, 0], [], []>} : vector<1x32xbf16>, vector<8x32xbf16>, vector<1x8xf32> -> vector<1x8xf32>
    %c0_22 = arith.constant 0 : index
    %c0_23 = arith.constant 0 : index
    %c0_24 = arith.constant 0 : index
    %31 = vector.load %arg7[%c0_22, %c0_23, %c0_24] : memref<1x1x1xf32, #tpu.memory_space<vmem>>, vector<1x1x1xf32>
    %32 = vector.shape_cast %31 : vector<1x1x1xf32> to vector<1x1xf32>
    %33 = vector.broadcast %32 : vector<1x1xf32> to vector<1x8xf32>
    %34 = arith.addf %30, %33 : vector<1x8xf32>
    %cst_25 = arith.constant 0.000000e+00 : f32
    %35 = vector.broadcast %cst_25 : f32 to vector<1x8xf32>
    %36 = arith.cmpf oge, %34, %35 : vector<1x8xf32>
    %cst_26 = arith.constant 0.00999999977 : f32
    %37 = vector.broadcast %cst_26 : f32 to vector<1x8xf32>
    %38 = arith.mulf %37, %34 : vector<1x8xf32>
    %39 = arith.select %36, %34, %38 : vector<1x8xi1>, vector<1x8xf32>
    %cst_27 = arith.constant 0.000000e+00 : f32
    %40 = vector.broadcast %cst_27 : f32 to vector<1x120xf32>
    %41 = tpu.concatenate %39, %40 in 1 : vector<1x8xf32>, vector<1x120xf32> -> vector<1x128xf32>
    %c0_28 = arith.constant 0 : index
    %c0_29 = arith.constant 0 : index
    %c0_30 = arith.constant 0 : index
    %42 = vector.load %arg8[%c0_28, %c0_29, %c0_30] : memref<1x1x128xf32, #tpu.memory_space<vmem>>, vector<1x1x128xf32>
    %43 = vector.shape_cast %42 : vector<1x1x128xf32> to vector<1x128xf32>
    %44 = vector.shape_cast %41 : vector<1x128xf32> to vector<1x1x128xf32>
    tpu.vector_store %arg8[%c0_28, %c0_29, %c0_30], %44 {strides = array<i32>} : memref<1x1x128xf32, #tpu.memory_space<vmem>>, vector<1x1x128xf32>,
    return
  }
  func.func @transform_0(%arg0: i32) -> (i32, i32) {
    %c0_i32 = arith.constant 0 : i32
    %c0_i32_0 = arith.constant 0 : i32
    %c0_i32_1 = arith.constant 0 : i32
    return %c0_i32, %c0_i32_0 : i32, i32
  }
  func.func @transform_1(%arg0: i32) -> (i32, i32, i32) {
    %c0_i32 = arith.constant 0 : i32
    %c0_i32_0 = arith.constant 0 : i32
    %c0_i32_1 = arith.constant 0 : i32
    return %arg0, %c0_i32, %c0_i32_0 : i32, i32, i32
  }
  func.func @transform_2(%arg0: i32) -> (i32, i32, i32) {
    %c0_i32 = arith.constant 0 : i32
    %c0_i32_0 = arith.constant 0 : i32
    %c0_i32_1 = arith.constant 0 : i32
    return %arg0, %c0_i32, %c0_i32_0 : i32, i32, i32
  }
  func.func @transform_3(%arg0: i32) -> (i32, i32, i32) {
    %c0_i32 = arith.constant 0 : i32
    %c0_i32_0 = arith.constant 0 : i32
    %c0_i32_1 = arith.constant 0 : i32
    return %arg0, %c0_i32, %c0_i32_0 : i32, i32, i32
  }
  func.func @transform_4(%arg0: i32) -> (i32, i32, i32) {
    %c0_i32 = arith.constant 0 : i32
    %c0_i32_0 = arith.constant 0 : i32
    %c0_i32_1 = arith.constant 0 : i32
    return %arg0, %c0_i32, %c0_i32_0 : i32, i32, i32
  }
  func.func @transform_5(%arg0: i32) -> (i32, i32, i32) {
    %c0_i32 = arith.constant 0 : i32
    %c0_i32_0 = arith.constant 0 : i32
    %c0_i32_1 = arith.constant 0 : i32
    return %arg0, %c0_i32, %c0_i32_0 : i32, i32, i32
  }
  func.func @transform_6(%arg0: i32) -> (i32, i32, i32) {
    %c0_i32 = arith.constant 0 : i32
    %c0_i32_0 = arith.constant 0 : i32
    %c0_i32_1 = arith.constant 0 : i32
    return %arg0, %c0_i32, %c0_i32_0 : i32, i32, i32
  }
  func.func @transform_7(%arg0: i32) -> (i32, i32, i32) {
    %c0_i32 = arith.constant 0 : i32
    %c0_i32_0 = arith.constant 0 : i32
    %c0_i32_1 = arith.constant 0 : i32
    return %arg0, %c0_i32, %c0_i32_0 : i32, i32, i32
  }
}

</mosaic_0001>

<bundles_post_ra>
// kernel: tpu_custom_call.1
= control target key start
LH: loop header
LB: loop body
LE: loop exit
PB: predicated region body
PF: predicated region fallthrough
CT: control target
= control target key end

     0   :  { %12 = vsyncpa [#allocation3], 0  ;;  %s1016_s0 = inlined_call_operand.vmem [shape: f32[8,4], index: 0, kind: input, shape index: {}]   ;;  %s1017_s1 = inlined_call_operand.vmem [shape: bf16[4,4,64], index: 1, kind: input, shape index: {}]   ;;  %s1018_s2 = inlined_call_operand.vmem [shape: f32[4,1,64], index: 2, kind: input, shape index: {}]   ;;  %s1019_s3 = inlined_call_operand.vmem [shape: bf16[4,64,32], index: 3, kind: input, shape index: {}]   ;;  %s1020_s4 = inlined_call_operand.vmem [shape: f32[4,1,32], index: 4, kind: input, shape index: {}]   ;;  %s1021_s5 = inlined_call_operand.vmem [shape: bf16[4,1,32], index: 5, kind: input, shape index: {}]   ;;  %s1022_s6 = inlined_call_operand.vmem [shape: f32[4,1,1], index: 6, kind: input, shape index: {}]   ;;  %s1023_s7 = inlined_call_operand.hbm [shape: f32[4,1,128], index: 7, kind: output, shape index: {}]  }
   0x1   :  { %14 = vsyncpa [#allocation3 + $0x1], 0  ;;  %s887_s24 = smov 0   ;;  %s889_s25 = smov 0  }
   0x2   :  { %s891_s26 = smov 0   ;;  %s893_s27 = smov 0  }
   0x3 LB: > { %s908_s28 = sadd.s32 4294967295, %s841_s27   ;;  %s679_s29 = sadd.s32 4294967294, %s841_s27   ;;  %s841_s27 = sphi %s893_s27, %s1029_s27   ;;  %s837_s26 = sphi %s891_s26, %s1028_s26   ;;  %s833_s25 = sphi %s889_s25, %s1027_s25   ;;  %s829_s24 = sphi %s887_s24, %s1026_s24  }
   0x4   : > { %s912_s30 = sadd.s32 1, %s841_s27   ;;  %s204_s8 = sadd.s32 1, %s837_s26 }
   0x5   : > { %s201_s9 = ssub.s32 %s841_s27, %s912_s30  ;;  %p214_p0 = scmp.ne.s32.totalorder %s837_s26, %s833_s25 }
   0x6   : > { %p202_p1 = scmp.eq.s32.totalorder %s201_s9, 0  ;;  %p215_p2 = scmp.eq.s32.totalorder %s908_s28, 3 }
   0x7   : > { %p220_p3 = scmp.ne.s32.totalorder %s833_s25, %s829_s24  ;;  %p221_p4 = scmp.eq.s32.totalorder %s679_s29, 3 }
   0x8   : > { %s923_s10 = scalar_select %p202_p1, %s837_s26, %s204_s8  }
   0x9   : > { %p925_p5 = por %p215_p2, %p214_p0  ;;  %p929_p6 = por %p221_p4, %p220_p3 }
   0xa   : > { %p682_p7 = scmp.ge.s32.totalorder %s841_s27, 1  ;;  %p281_p8 = scmp.lt.s32.totalorder %s841_s27, 5 }
   0xc   : > { %p282_p9 = pnand %p682_p7, %p281_p8 }
   0xd   : > { %p328_p10 = scmp.lt.s32.totalorder (!%p282_p9), %s908_s28, 3  ;;  %v843_v0 = vmov (!%p282_p9), 0.0   ;;  %vm844_vm0 = vmmov (!%p282_p9), 0   ;;  %vm364_vm1 = vcmask (!%p282_p9), 1041408   ;;  %v350_v1 = vld [vmem:[%s1016_s0] sm:$0xff] (!%p282_p9)  ;;  %vm360_vm2 = vcmask (!%p282_p9), 31744  }
   0xe   : > { %285 = sbr.rel (%p282_p9) target bundleno = 708 (0x2c4), region = 48  ;;  %708 = vmatprep.subr.bf16.mxu0 (!%p282_p9), %v843_v0  ;;  %710 = vmatprep.mubr.msk.bf16.mxu0 (!%p282_p9), %vm844_vm0, %v843_v0  ;;  %v351_v4 = vpack.c.bf16 (!%p282_p9), %v350_v1, %v350_v1  ;;  %vm451_vm4 = vcmask (!%p282_p9), 523264   ;;  %v845_v18 = vmov (!%p282_p9), 0   ;;  %vm510_vm6 = vcmask (!%p282_p9), 261120   ;;  %s695_s29 = sshll.u32 (!%p282_p9), %s908_s28, 4 }
   0xf   : > { %714 = vmatprep.subr.bf16.mxu1 (!%p282_p9), %v843_v0  ;;  %722 = vmatprep.mubr.msk.bf16.mxu1 (!%p282_p9), %vm844_vm0, %v843_v0  ;;  %v506_v31 = vlaneseq (!%p282_p9)  ;;  %vm560_vm8 = vcmask (!%p282_p9), 64512   ;;  %s974_s15 = scalar_lea.hbm (!%p282_p9), %s1023_s7, %s695_s29 }
  0x10   : > { %774 = vset.pattern.permute.xlu0 (!%p282_p9), %v845_v18 }
  0x11   : > { %v507_v32 = vshrl.u32 (!%p282_p9), %v506_v31, 7 }
  0x13   : > { %v508_v33 = vsub.s32 (!%p282_p9), 0, %v507_v32 }
  0x15   : > { %s938_s13 = scalar_select %p328_p10, %s908_s28, 3 }
  0x17   : > { %s683_s14 = sshll.u32 %s938_s13, 1  ;;  %s698_s17 = sshll.u32 %s938_s13, 5 }
  0x18   : > { %s331_s20 = scalar_lea.vmem %s1017_s1, %s683_s14  ;;  %s339_s23 = scalar_lea.vmem %s1019_s3, %s698_s17 }
  0x19   : > { %v352_v2 = vld [vmem:[%s331_s20] sm:$0x3]  ;;  %v776_v6 = vld [vmem:[%s339_s23 + $0x8] sm:$0xff]   ;;  %v777_v7 = vld [vmem:[%s339_s23 + $0x10] sm:$0xff]   ;;  %s334_s9 = scalar_lea.vmem %s1018_s2, %s938_s13  ;;  %s348_s16 = scalar_lea.vmem %s1022_s6, %s938_s13 }
  0x1a   : > { %v366_v3 = vsel %vm364_vm1, %v352_v2, 0  ;;  %v775_v5 = vld [vmem:[%s339_s23] sm:$0xff]   ;;  %v778_v8 = vld [vmem:[%s339_s23 + $0x18] sm:$0xff]   ;;  %s342_s19 = scalar_lea.vmem %s1020_s4, %s938_s13  ;;  %s345_s22 = scalar_lea.vmem %s1021_s5, %s938_s13 }
  0x1b   : > { %709 = vmatpush3.bf16.msra.mxu0 %v366_v3  ;;  %715 = vmatpush3.bf16.msra.mxu1 %v775_v5  ;;  %v686_v9 = vld [vmem:[%s334_s9] ss:$0 sm:$0xff]  ;;  %s326_s23 = sand.u32 1, %s833_s25   ;;  %s846_s17 = smov [#allocation2]  }
  0x1c   : > { %726 = vmatprep.subr.bf16.mxu0 %v843_v0  ;;  %716 = vmatprep.subr.bf16.mxu1 %v843_v0  ;;  %v500_v19 = vld [vmem:[%s348_s16] sm:$0x1]  ;;  %s327_s8 = scalar_lea.vmem [#allocation2], %s326_s23  ;;  %s564_s28 = scalar_lea.sflag [#allocation3], %s326_s23 }
  0x1d   : > { %503 = vperm.xlu0 %774, %v500_v19   ;;  %v688_v20 = vld [vmem:[%s342_s19] ss:$0 sm:$0xff]  ;;  %s576_s9 = sshll.u32 %s327_s8, 4  ;;  %s783_s18 = sshll.u32 %s846_s17, 4  ;;  %s976_s9 = int_to_ptr.vmem [resolvable:$true] %s576_s9  ;;  %s784_s18 = int_to_ptr.vmem [resolvable:$false] %s783_s18 }
  0x1e   : > { %711 = vmatmul.mubr.msk.bf16.vlgmr.msra.gmra.mrb[0].mxu0 %vm360_vm2, %v351_v4  ;;  %v498_v30 = vld [vmem:[%s345_s22] sm:$0x1]  ;;  %s779_s16 = scalar_lea.vmem %s976_s9, 16  ;;  %s785_s19 = scalar_lea.vmem %s784_s18, 32 }
  0x1f   : > { %728 = vmatprep.mubr.msk.bf16.mxu0 %vm844_vm0, %v843_v0  ;;  %717 = vmatpush3.bf16.msra.mxu1 %v776_v6  ;;  %p780_p11 = scmp.ne.s32.totalorder %s976_s9, %s779_s16  ;;  %p786_p0 = scmp.lt.s32.totalorder %s976_s9, %s784_s18 }
  0x20   : > { %718 = vmatprep.subr.bf16.mxu1 %v843_v0  ;;  %p787_p1 = scmp.lt.s32.totalorder %s785_s19, %s779_s16 }
  0x21   : > { %p781_p12 = pnand %p780_p11, %p925_p5 }
  0x22   : > { %p788_p2 = por %p787_p1, %p786_p0 }
  0x23   : > { %719 = vmatpush3.bf16.msra.mxu1 %v777_v7  ;;  %p782_p13 = pneg %p781_p12 }
  0x24   : > { %720 = vmatprep.subr.bf16.mxu1 %v843_v0 }
  0x25   : > { %p789_p3 = pnand %p788_p2, %p782_p13 }
  0x27   : > { %721 = vmatpush3.bf16.msra.mxu1 %v778_v8 }
  0x9c   : > { %v504_v34 = vpop.permute.xlu0 %503 }
  0x9d   : > { %v509_v35 = vrot.slane %v504_v34, %v508_v33 }
  0xf1   : > { %v402_v10 = vpop.f32.mrb[0].mxu0 }
  0xf2   : > { %v403_v11 = vadd.f32 %v686_v9, %v402_v10  ;;  %v712_v12 = vpop.f32.mrb[1].mxu0 }
  0xf3   : > { %v405_v13 = vpop.f32.mrb[2].mxu0 }
  0xf4   : > { %vm408_vm3 = vcmp.ge.f32.partialorder %v403_v11, 0.0  ;;  %v409_v14 = vmul.f32 0.01, %v403_v11  ;;  %v713_v15 = vpop.f32.mrb[3].mxu0 }
  0xf6   : > { %v410_v16 = vsel %vm408_vm3, %v403_v11, %v409_v14 }
  0xf7   : > { %v411_v17 = vpack.c.bf16 %v410_v16, %v410_v16 }
  0xf9   : > { %723 = vmatmul.mubr.msk.bf16.vlgmr.msra.gmra.mrb[0].mxu1 %vm451_vm4, %v411_v17 }
 0x1cc   : > { %v489_v21 = vpop.f32.mrb[0].mxu1 }
 0x1cd   : > { %v490_v22 = vadd.f32 %v688_v20, %v489_v21  ;;  %v724_v23 = vpop.f32.mrb[1].mxu1 }
 0x1ce   : > { %v492_v24 = vpop.f32.mrb[2].mxu1 }
 0x1cf   : > { %vm495_vm5 = vcmp.ge.f32.partialorder %v490_v22, 0.0  ;;  %v496_v25 = vmul.f32 0.01, %v490_v22  ;;  %v725_v26 = vpop.f32.mrb[3].mxu1 }
 0x1d1   : > { %v497_v27 = vsel %vm495_vm5, %v490_v22, %v496_v25 }
 0x1d2   : > { %v499_v28 = vpack.c.bf16 %v497_v27, %v497_v27 }
 0x1d4   : > { %v515_v29 = vsel %vm510_vm6, %v499_v28, 0 }
 0x1d5   : > { %727 = vmatpush3.bf16.xpose.msra.mxu0 %v515_v29 }
 0x1dc   : > { %729 = vmatmul.mubr.msk.bf16.vlgmr.msra.gmra.mrb[4].mxu0 %vm510_vm6, %v498_v30 }
 0x2af   : > { %v551_v36 = vpop.f32.mrb[4].mxu0 }
 0x2b0   : > { %v552_v37 = vadd.f32 %v551_v36, %v509_v35  ;;  %v730_v38 = vpop.f32.mrb[5].mxu0 }
 0x2b1   : > { %v554_v39 = vpop.f32.mrb[6].mxu0 }
 0x2b2   : > { %vm557_vm7 = vcmp.ge.f32.partialorder %v552_v37, 0.0  ;;  %v558_v40 = vmul.f32 0.01, %v552_v37  ;;  %v731_v41 = vpop.f32.mrb[7].mxu0 }
 0x2b4   : > { %v559_v42 = vsel %vm557_vm7, %v552_v37, %v558_v40 }
 0x2b5   : > { %v561_v43 = vsel %vm560_vm8, %v559_v42, 0.0 }
 0x2b6   : > { %562 = vst [vmem:[%s327_s8] sm:$0x1] %v561_v43 }
 0x2b7   : > { %792 = shalt.err (!%p789_p3)
}
 0x2b8   : > { %s793_s20 = scalar_lea.hbm %s974_s15, 16  ;;  %s797_s23 = scalar_lea.hbm %s1023_s7, 64 }
 0x2b9   : > { %p794_p4 = scmp.ne.s32.totalorder %s974_s15, %s793_s20  ;;  %p798_p9 = scmp.lt.u32.totalorder %s974_s15, %s1023_s7 }
 0x2ba   : > { %p799_p10 = scmp.lt.u32.totalorder %s797_s23, %s793_s20  ;;  %p801_p12 = scmp.lt.u32.totalorder %s793_s20, %s974_s15 }
 0x2bb   : > { %p795_p7 = pnand %p794_p4, %p925_p5 }
 0x2bc   : > { %p800_p11 = por %p799_p10, %p798_p9 }
 0x2bd   : > { %p796_p8 = pneg %p795_p7 }
 0x2be   : > { %p802_p13 = por %p801_p12, %p800_p11 }
 0x2c0   : > { %p803_p0 = pnand %p802_p13, %p796_p8 }
 0x2c2   : > { %806 = shalt.err (!%p803_p0)
}
 0x2c3   : > { %732 = dma.vmem_to_hbm [thread:$0]  (%p925_p5), %s976_s9, 16, %s974_s15, %s564_s28  }
 0x2c4 PF: > { %p738_p1 = scmp.ge.s32.totalorder %s841_s27, 2  ;;  %s588_s13 = sand.u32 1, %s829_s24  }
 0x2c5   : > { %s589_s14 = scalar_lea.sflag [#allocation3], %s588_s13 }
 0x2c6   : > { %p735_p2 = pnand %p738_p1, %p929_p6 }
 0x2c8   : > { %824 = dma.done.wait (!%p735_p2), %s589_s14, 16  }
 0x2c9   : > { %826 = vsyncadd (!%p735_p2), %s589_s14, 4294967280  ;;  %p17_p3 = scmp.ge.s32.totalorder %s912_s30, 6   ;;  %s1026_s24 = smov %s833_s25 }
 0x2ca   : > { %s1027_s25 = smov %s837_s26  ;;  %s1028_s26 = smov %s923_s10 }
 0x2cb   : > { %s1029_s27 = smov %s912_s30  ;;  %19 = sbr.rel (!%p17_p3) target bundleno = 3 (0x3), region = 98 }
 0x2d2   :  { %593 = vsyncpa [#allocation3], 1 }
 0x2d3   :  { %595 = vsyncpa [#allocation3 + $0x1], 1 }

</bundles_post_ra>
